<compile_context>
chip_gen: v7x
topology: tpu7x:2x2x1
jax: 0.10.0
libtpu: 0.0.40
codegen_flags: <defaults>
</compile_context>

<pallas_src>
import functools

import jax
import jax.numpy as jnp
from jax.experimental import pallas as pl
from jax.experimental.pallas import tpu as pltpu


# ----------------------------- kernels ------------------------------------ #

def _fused_slices_kernel(x_ref, w_ref, b_ref, o_ref, *, n_slices, din, dout):
    """Training path: per-slice Linear_i, 3 unrolled MXU dots per grid step.

    x_ref: [TB, n*Din]  (compute dtype, e.g. bf16)
    w_ref: [n, Din, Dout]
    b_ref: [n, 1, Dout] (f32)
    o_ref: [TB, n*Dout]
    """
    for i in range(n_slices):                                  # static unroll
        xi = x_ref[:, i * din:(i + 1) * din]                   # [TB, Din]
        acc = jnp.dot(xi, w_ref[i], preferred_element_type=jnp.float32)
        o_ref[:, i * dout:(i + 1) * dout] = (
            acc + b_ref[i].astype(jnp.float32)).astype(o_ref.dtype)


def _single_linear_kernel(x_ref, w_ref, b_ref, o_ref):
    """Eval path: one flattened GEMM against Linear_0."""
    acc = jnp.dot(x_ref[...], w_ref[...], preferred_element_type=jnp.float32)
    o_ref[...] = (acc + b_ref[...].astype(jnp.float32)).astype(o_ref.dtype)


# ----------------------------- wrapper ------------------------------------ #

_SUBLANE = {4: 8, 2: 16, 1: 32}   # min second-minor multiple per itemsize


def _pick_batch_tile(rows, per_row_bytes, fixed_bytes, budget_bytes, sublane, cap):
    """Largest sublane-aligned batch tile fitting the VMEM working-set budget."""
    if rows <= sublane:
        return rows                                   # full-dim block is legal
    avail = max(budget_bytes - fixed_bytes, per_row_bytes * sublane)
    tb = min(rows, cap, max(sublane, avail // per_row_bytes))
    tb = max(sublane, (tb // sublane) * sublane)
    return min(tb, rows)


def graph_memory_forward(joint_embedding, weights, biases, *,
                         training=True,
                         compute_dtype=jnp.bfloat16,
                         max_block_b=1024,
                         vmem_budget_bytes=40 * 1024 * 1024,
                         vmem_limit_bytes=48 * 1024 * 1024):
    """Pallas implementation of GparhMemoryLayer.forward.

    joint_embedding: [B, 3, Din]
    weights:         [3, Dout, Din]   (stacked PyTorch nn.Linear weights)
    biases:          [3, Dout]
    returns          [B, 3, Dout]     (dtype of joint_embedding)
    """
    B, S, Din = joint_embedding.shape
    assert S == 3, "GparhMemoryLayer expects 3 slices along dim 1"
    Dout = weights.shape[1]
    out_dtype = joint_embedding.dtype

    cb = jnp.dtype(compute_dtype).itemsize
    ob = jnp.dtype(out_dtype).itemsize
    sublane = _SUBLANE.get(cb, 8)

    # bf16 cast (fuses with upstream producers in a real model); weight
    # transpose is batch-independent (O(3*Din*Dout)) and would normally be
    # pre-done once outside the step.
    x_c = joint_embedding.astype(compute_dtype)
    w_c = jnp.transpose(weights, (0, 2, 1)).astype(compute_dtype)   # [3, Din, Dout]
    b_f = biases.astype(jnp.float32)

    cparams = pltpu.CompilerParams(
        dimension_semantics=("parallel",),
        vmem_limit_bytes=vmem_limit_bytes,
    )

    if training:
        x2d = x_c.reshape(B, 3 * Din)                 # free reshape, no transpose
        b3 = b_f.reshape(3, 1, Dout)

        # VMEM accounting: dbl-buffered x/out rows + dbl-buffered weights/bias.
        fixed = 2 * 3 * Din * Dout * cb + 2 * 3 * Dout * 4
        per_row = 2 * 3 * Din * cb + 2 * 3 * Dout * ob
        tb = _pick_batch_tile(B, per_row, fixed, vmem_budget_bytes,
                              sublane, max_block_b)

        kernel = functools.partial(_fused_slices_kernel,
                                   n_slices=3, din=Din, dout=Dout)
        out2d = pl.pallas_call(
            kernel,
            out_shape=jax.ShapeDtypeStruct((B, 3 * Dout), out_dtype),
            grid=(pl.cdiv(B, tb),),
            in_specs=[
                pl.BlockSpec((tb, 3 * Din), lambda bt: (bt, 0)),
                pl.BlockSpec((3, Din, Dout), lambda bt: (0, 0, 0)),
                pl.BlockSpec((3, 1, Dout), lambda bt: (0, 0, 0)),
            ],
            out_specs=pl.BlockSpec((tb, 3 * Dout), lambda bt: (bt, 0)),
            compiler_params=cparams,
        )(x2d, w_c, b3)
        return out2d.reshape(B, 3, Dout)              # free reshape back

    # ---- eval: Linear_0 on the whole tensor -> one flattened GEMM ---------
    rows = B * 3
    xf = x_c.reshape(rows, Din)                       # free reshape
    w0 = w_c[0]                                       # [Din, Dout]
    b0 = b_f[0].reshape(1, Dout)

    fixed = 2 * Din * Dout * cb + 2 * Dout * 4
    per_row = 2 * Din * cb + 2 * Dout * ob
    tb = _pick_batch_tile(rows, per_row, fixed, vmem_budget_bytes,
                          sublane, max_block_b)

    outf = pl.pallas_call(
        _single_linear_kernel,
        out_shape=jax.ShapeDtypeStruct((rows, Dout), out_dtype),
        grid=(pl.cdiv(rows, tb),),
        in_specs=[
            pl.BlockSpec((tb, Din), lambda bt: (bt, 0)),
            pl.BlockSpec((Din, Dout), lambda bt: (0, 0)),
            pl.BlockSpec((1, Dout), lambda bt: (0, 0)),
        ],
        out_specs=pl.BlockSpec((tb, Dout), lambda bt: (bt, 0)),
        compiler_params=cparams,
    )(xf, w0, b0)
    return outf.reshape(B, 3, Dout)


# ----------------------------- reference ---------------------------------- #

def graph_memory_reference(x, weights, biases, *, training=True,
                           compute_dtype=jnp.float32):
    """Pure-JAX (XLA) reference with matching input quantization."""
    xc = x.astype(compute_dtype)
    wc = weights.astype(compute_dtype)
    bf = biases.astype(jnp.float32)
    if training:
        feats = [
            jnp.dot(xc[:, i], wc[i].T, preferred_element_type=jnp.float32) + bf[i]
            for i in range(3)
        ]
        return jnp.stack(feats, axis=1).astype(x.dtype)
    out = jax.lax.dot_general(
        xc, wc[0], dimension_numbers=(((2,), (1,)), ((), ())),
        preferred_element_type=jnp.float32) + bf[0]
    return out.astype(x.dtype)


# ------------------------------- demo -------------------------------------- #

if __name__ == "__main__":
    # Small shapes consistent with the module: [B, 3, Din] joint embedding,
    # lane-dense feature dims (128) so blocks are unmasked (8/16,128) tiles.
    B, S, Din, Dout = 16, 3, 128, 128

    key = jax.random.PRNGKey(0)
    kx, kw, kb = jax.random.split(key, 3)
    x = jax.random.normal(kx, (B, S, Din), dtype=jnp.float32)
    w = 0.1 * jax.random.normal(kw, (S, Dout, Din), dtype=jnp.float32)
    b = 0.1 * jax.random.normal(kb, (S, Dout), dtype=jnp.float32)

    # Training-mode path (three distinct linears, stacked).
    out_tr = jax.block_until_ready(graph_memory_forward(x, w, b, training=True))
    ref_tr = jax.block_until_ready(
        graph_memory_reference(x, w, b, training=True,
                               compute_dtype=jnp.bfloat16))
    assert out_tr.shape == (B, S, Dout), out_tr.shape
    assert jnp.allclose(out_tr, ref_tr, rtol=2e-2, atol=2e-2), \
        f"train max abs err = {jnp.max(jnp.abs(out_tr - ref_tr))}"

    # Eval-mode path (linears[0] applied to the whole tensor).
    out_ev = jax.block_until_ready(graph_memory_forward(x, w, b, training=False))
    ref_ev = jax.block_until_ready(
        graph_memory_reference(x, w, b, training=False,
                               compute_dtype=jnp.bfloat16))
    assert out_ev.shape == (B, S, Dout), out_ev.shape
    assert jnp.allclose(out_ev, ref_ev, rtol=2e-2, atol=2e-2), \
        f"eval max abs err = {jnp.max(jnp.abs(out_ev - ref_ev))}"

    print("KERNEL_OK")
</pallas_src>

<mosaic_0001>
module attributes {stable_mosaic.version = 11 : i64} {
  func.func @_fused_slices_kernel(%arg0: i32, %arg1: memref<16x384xbf16, #tpu.memory_space<vmem>>, %arg2: memref<3x128x128xbf16, #tpu.memory_space<vmem>>, %arg3: memref<3x1x128xf32, #tpu.memory_space<vmem>>, %arg4: memref<16x384xf32, #tpu.memory_space<vmem>>) attributes {dimension_semantics = [#tpu.dimension_semantics<parallel>], iteration_bounds = array<i64: 1>, scalar_prefetch = 0 : i64, scratch_operands = 0 : i64, tpu.core_type = #tpu.core_type<tc>, window_params = [{transform_indices = @transform_0, window_bounds = array<i64: 16, 384>}, {pipeline_mode = #tpu.pipeline_mode<synchronous>, transform_indices = @transform_1, window_bounds = array<i64: 3, 128, 128>}, {pipeline_mode = #tpu.pipeline_mode<synchronous>, transform_indices = @transform_2, window_bounds = array<i64: 3, 1, 128>}, {transform_indices = @transform_3, window_bounds = array<i64: 16, 384>}]} {
    %c0 = arith.constant 0 : index
    %c0_0 = arith.constant 0 : index
    %0 = vector.load %arg1[%c0, %c0_0] : memref<16x384xbf16, #tpu.memory_space<vmem>>, vector<16x128xbf16>
    %c0_1 = arith.constant 0 : index
    %c0_2 = arith.constant 0 : index
    %c0_3 = arith.constant 0 : index
    %1 = vector.load %arg2[%c0_1, %c0_2, %c0_3] : memref<3x128x128xbf16, #tpu.memory_space<vmem>>, vector<1x128x128xbf16>
    %2 = vector.shape_cast %1 : vector<1x128x128xbf16> to vector<128x128xbf16>
    %cst = arith.constant dense<0.000000e+00> : vector<16x128xf32>
    %3 = tpu.matmul %0, %2, %cst {dimension_numbers = #tpu.dot_dimension_numbers<[1], [0], [0], [1], [0, 0, 1, 1], [], []>} : vector<16x128xbf16>, vector<128x128xbf16>, vector<16x128xf32> -> vector<16x128xf32>
    %c0_4 = arith.constant 0 : index
    %c0_5 = arith.constant 0 : index
    %c0_6 = arith.constant 0 : index
    %4 = vector.load %arg3[%c0_4, %c0_5, %c0_6] : memref<3x1x128xf32, #tpu.memory_space<vmem>>, vector<1x1x128xf32>
    %5 = vector.shape_cast %4 : vector<1x1x128xf32> to vector<1x128xf32>
    %6 = vector.broadcast %5 : vector<1x128xf32> to vector<16x128xf32>
    %7 = arith.addf %3, %6 : vector<16x128xf32>
    %c0_7 = arith.constant 0 : index
    %c0_8 = arith.constant 0 : index
    %8 = vector.load %arg4[%c0_7, %c0_8] : memref<16x384xf32, #tpu.memory_space<vmem>>, vector<16x128xf32>
    tpu.vector_store %arg4[%c0_7, %c0_8], %7 {strides = array<i32>} : memref<16x384xf32, #tpu.memory_space<vmem>>, vector<16x128xf32>,
    %c0_9 = arith.constant 0 : index
    %c128 = arith.constant 128 : index
    %9 = vector.load %arg1[%c0_9, %c128] : memref<16x384xbf16, #tpu.memory_space<vmem>>, vector<16x128xbf16>
    %c1 = arith.constant 1 : index
    %c0_10 = arith.constant 0 : index
    %c0_11 = arith.constant 0 : index
    %10 = vector.load %arg2[%c1, %c0_10, %c0_11] : memref<3x128x128xbf16, #tpu.memory_space<vmem>>, vector<1x128x128xbf16>
    %11 = vector.shape_cast %10 : vector<1x128x128xbf16> to vector<128x128xbf16>
    %cst_12 = arith.constant dense<0.000000e+00> : vector<16x128xf32>
    %12 = tpu.matmul %9, %11, %cst_12 {dimension_numbers = #tpu.dot_dimension_numbers<[1], [0], [0], [1], [0, 0, 1, 1], [], []>} : vector<16x128xbf16>, vector<128x128xbf16>, vector<16x128xf32> -> vector<16x128xf32>
    %c1_13 = arith.constant 1 : index
    %c0_14 = arith.constant 0 : index
    %c0_15 = arith.constant 0 : index
    %13 = vector.load %arg3[%c1_13, %c0_14, %c0_15] : memref<3x1x128xf32, #tpu.memory_space<vmem>>, vector<1x1x128xf32>
    %14 = vector.shape_cast %13 : vector<1x1x128xf32> to vector<1x128xf32>
    %15 = vector.broadcast %14 : vector<1x128xf32> to vector<16x128xf32>
    %16 = arith.addf %12, %15 : vector<16x128xf32>
    %c0_16 = arith.constant 0 : index
    %c128_17 = arith.constant 128 : index
    %17 = vector.load %arg4[%c0_16, %c128_17] : memref<16x384xf32, #tpu.memory_space<vmem>>, vector<16x128xf32>
    tpu.vector_store %arg4[%c0_16, %c128_17], %16 {strides = array<i32>} : memref<16x384xf32, #tpu.memory_space<vmem>>, vector<16x128xf32>,
    %c0_18 = arith.constant 0 : index
    %c256 = arith.constant 256 : index
    %18 = vector.load %arg1[%c0_18, %c256] : memref<16x384xbf16, #tpu.memory_space<vmem>>, vector<16x128xbf16>
    %c2 = arith.constant 2 : index
    %c0_19 = arith.constant 0 : index
    %c0_20 = arith.constant 0 : index
    %19 = vector.load %arg2[%c2, %c0_19, %c0_20] : memref<3x128x128xbf16, #tpu.memory_space<vmem>>, vector<1x128x128xbf16>
    %20 = vector.shape_cast %19 : vector<1x128x128xbf16> to vector<128x128xbf16>
    %cst_21 = arith.constant dense<0.000000e+00> : vector<16x128xf32>
    %21 = tpu.matmul %18, %20, %cst_21 {dimension_numbers = #tpu.dot_dimension_numbers<[1], [0], [0], [1], [0, 0, 1, 1], [], []>} : vector<16x128xbf16>, vector<128x128xbf16>, vector<16x128xf32> -> vector<16x128xf32>
    %c2_22 = arith.constant 2 : index
    %c0_23 = arith.constant 0 : index
    %c0_24 = arith.constant 0 : index
    %22 = vector.load %arg3[%c2_22, %c0_23, %c0_24] : memref<3x1x128xf32, #tpu.memory_space<vmem>>, vector<1x1x128xf32>
    %23 = vector.shape_cast %22 : vector<1x1x128xf32> to vector<1x128xf32>
    %24 = vector.broadcast %23 : vector<1x128xf32> to vector<16x128xf32>
    %25 = arith.addf %21, %24 : vector<16x128xf32>
    %c0_25 = arith.constant 0 : index
    %c256_26 = arith.constant 256 : index
    %26 = vector.load %arg4[%c0_25, %c256_26] : memref<16x384xf32, #tpu.memory_space<vmem>>, vector<16x128xf32>
    tpu.vector_store %arg4[%c0_25, %c256_26], %25 {strides = array<i32>} : memref<16x384xf32, #tpu.memory_space<vmem>>, vector<16x128xf32>,
    return
  }
  func.func @transform_0(%arg0: i32) -> (i32, i32) {
    %c0_i32 = arith.constant 0 : i32
    %c0_i32_0 = arith.constant 0 : i32
    return %arg0, %c0_i32 : i32, i32
  }
  func.func @transform_1(%arg0: i32) -> (i32, i32, i32) {
    %c0_i32 = arith.constant 0 : i32
    %c0_i32_0 = arith.constant 0 : i32
    %c0_i32_1 = arith.constant 0 : i32
    %c0_i32_2 = arith.constant 0 : i32
    return %c0_i32, %c0_i32_0, %c0_i32_1 : i32, i32, i32
  }
  func.func @transform_2(%arg0: i32) -> (i32, i32, i32) {
    %c0_i32 = arith.constant 0 : i32
    %c0_i32_0 = arith.constant 0 : i32
    %c0_i32_1 = arith.constant 0 : i32
    %c0_i32_2 = arith.constant 0 : i32
    return %c0_i32, %c0_i32_0, %c0_i32_1 : i32, i32, i32
  }
  func.func @transform_3(%arg0: i32) -> (i32, i32) {
    %c0_i32 = arith.constant 0 : i32
    %c0_i32_0 = arith.constant 0 : i32
    return %arg0, %c0_i32 : i32, i32
  }
}

</mosaic_0001>

<bundles_post_ra>
// kernel: tpu_custom_call.1
= control target key start
LH: loop header
LB: loop body
LE: loop exit
PB: predicated region body
PF: predicated region fallthrough
CT: control target
= control target key end

     0   :  { %8 = vsyncpa [#allocation3], 0  ;;  %s767_s0 = inlined_call_operand.hbm [shape: bf16[16,384], index: 0, kind: input, shape index: {}]   ;;  %s768_s1 = inlined_call_operand.hbm [shape: bf16[3,128,128], index: 1, kind: input, shape index: {}]   ;;  %s769_s2 = inlined_call_operand.vmem [shape: f32[3,1,128], index: 2, kind: input, shape index: {}]   ;;  %s770_s3 = inlined_call_operand.hbm [shape: f32[16,384], index: 3, kind: output, shape index: {}]  }
   0x1   :  { %9 = vsyncpa [#allocation6], 0 }
   0x2   :  { %10 = vsyncpa [#allocation4], 0  ;;  %s661_s12 = smov [#allocation2]   ;;  %s589_s16 = scalar_lea.hbm %s767_s0, 384 }
   0x3   :  { %s16_s13 = sshll.u32 %s661_s12, 4  ;;  %p590_p0 = scmp.ne.s32.totalorder %s767_s0, %s589_s16  ;;  %s17_s13 = int_to_ptr.vmem [resolvable:$true] %s16_s13 }
   0x4   :  { %p593_p1 = scmp.lt.u32.totalorder %s589_s16, %s767_s0 }
   0x6   :  { %p595_p2 = pnand %p593_p1, %p590_p0 }
   0x8   :  { %598 = shalt.err (!%p595_p2)
}
   0x9   :  { %s599_s21 = scalar_lea.vmem %s17_s13, 384  ;;  %p604_p4 = scmp.lt.s32.totalorder %s17_s13, %s17_s13 }
   0xa   :  { %p600_p3 = scmp.ne.s32.totalorder %s17_s13, %s599_s21  ;;  %p605_p5 = scmp.lt.s32.totalorder %s599_s21, %s599_s21 }
   0xc   :  { %p606_p6 = por %p605_p5, %p604_p4 }
   0xe   :  { %p607_p7 = pnand %p606_p6, %p600_p3 }
  0x10   :  { %610 = shalt.err (!%p607_p7)
}
  0x11   :  { %s662_s22 = smov 192   ;;  %s663_s23 = smov 12  }
  0x12   :  { %22 = dma.hbm_to_vmem [thread:$0]  %s767_s0, 384, %s17_s13, [#allocation3], %s662_s22, %s662_s22, %s663_s23  }
  0x13   :  { %s664_s26 = smov [#allocation5]   ;;  %s611_s30 = scalar_lea.hbm %s768_s1, 3072 }
  0x14   :  { %s28_s27 = sshll.u32 %s664_s26, 4  ;;  %p612_p8 = scmp.ne.s32.totalorder %s768_s1, %s611_s30  ;;  %s29_s27 = int_to_ptr.vmem [resolvable:$true] %s28_s27 }
  0x15   :  { %p615_p9 = scmp.lt.u32.totalorder %s611_s30, %s768_s1 }
  0x17   :  { %p617_p10 = pnand %p615_p9, %p612_p8 }
  0x19   :  { %620 = shalt.err (!%p617_p10)
}
  0x1a   :  { %s621_s8 = scalar_lea.vmem %s29_s27, 3072  ;;  %p626_p12 = scmp.lt.s32.totalorder %s29_s27, %s29_s27 }
  0x1b   :  { %p622_p11 = scmp.ne.s32.totalorder %s29_s27, %s621_s8  ;;  %p627_p13 = scmp.lt.s32.totalorder %s621_s8, %s621_s8 }
  0x1d   :  { %p628_p0 = por %p627_p13, %p626_p12 }
  0x1f   :  { %p629_p1 = pnand %p628_p0, %p622_p11 }
  0x21   :  { %632 = shalt.err (!%p629_p1)
}
  0x22   :  { %s665_s0 = smov 64   ;;  %s666_s9 = smov 4  }
  0x23   :  { %34 = dma.hbm_to_vmem [thread:$0]  %s768_s1, 3072, %s29_s27, [#allocation6], %s665_s0, %s665_s0, %s666_s9  }
  0x24   :  { %655 = dma.done.wait [#allocation3], 384  }
  0x25   :  { %656 = vsyncadd [#allocation3], 4294966912 }
  0x26   :  { %657 = dma.done.wait [#allocation6], 3072  }
  0x27   :  { %658 = vsyncadd [#allocation6], 4294964224  ;;  %v667_v0 = vmov 0.0   ;;  %vm668_vm0 = vmmov 0   ;;  %v562_v1 = vld [vmem:[#allocation5] sm:$0xff]   ;;  %v563_v2 = vld [vmem:[#allocation5 + $0x8] sm:$0xff]  }
  0x28   :  { %491 = vmatprep.subr.bf16.mxu0 %v667_v0  ;;  %511 = vmatprep.subr.bf16.mxu1 %v667_v0  ;;  %v564_v3 = vld [vmem:[#allocation5 + $0x10] sm:$0xff]   ;;  %v570_v4 = vld [vmem:[#allocation5 + $0x40] sm:$0xff]   ;;  %v565_v5 = vld [vmem:[#allocation5 + $0x18] sm:$0xff]   ;;  %s669_s17 = smov [#allocation7]  }
  0x29   :  { %507 = vmatprep.mubr.msk.bf16.mxu0 %vm668_vm0, %v667_v0  ;;  %527 = vmatprep.mubr.msk.bf16.mxu1 %vm668_vm0, %v667_v0  ;;  %v573_v6 = vld [vmem:[#allocation5 + $0x48] sm:$0xff]   ;;  %v566_v7 = vld [vmem:[#allocation5 + $0x20] sm:$0xff]   ;;  %v575_v8 = vld [vmem:[#allocation5 + $0x50] sm:$0xff]   ;;  %s419_s18 = sshll.u32 %s669_s17, 4  ;;  %s420_s18 = int_to_ptr.vmem [resolvable:$true] %s419_s18 }
  0x2a   :  { %492 = vmatpush3.bf16.msra.mxu0 %v562_v1  ;;  %512 = vmatpush3.bf16.msra.mxu1 %v570_v4  ;;  %v567_v9 = vld [vmem:[#allocation5 + $0x28] sm:$0xff]   ;;  %v577_v10 = vld [vmem:[#allocation5 + $0x58] sm:$0xff]   ;;  %v568_v11 = vld [vmem:[#allocation5 + $0x30] sm:$0xff]   ;;  %s633_s19 = scalar_lea.vmem %s420_s18, 768  ;;  %p638_p3 = scmp.lt.s32.totalorder %s420_s18, %s420_s18 }
  0x2b   :  { %493 = vmatprep.subr.bf16.mxu0 %v667_v0  ;;  %513 = vmatprep.subr.bf16.mxu1 %v667_v0  ;;  %v579_v12 = vld [vmem:[#allocation5 + $0x60] sm:$0xff]   ;;  %v569_v13 = vld [vmem:[#allocation5 + $0x38] sm:$0xff]   ;;  %v581_v14 = vld [vmem:[#allocation5 + $0x68] sm:$0xff]   ;;  %p634_p2 = scmp.ne.s32.totalorder %s420_s18, %s633_s19  ;;  %p639_p4 = scmp.lt.s32.totalorder %s633_s19, %s633_s19 }
  0x2c   :  { %v571_v15 = vld [vmem:[#allocation2] ss:$12 sps:$4 sm:$0xff]   ;;  %v572_v16 = vld [vmem:[#allocation5 + $0x80] sm:$0xff]   ;;  %v585_v19 = vld [vmem:[#allocation5 + $0x78] sm:$0xff]  }
  0x2d   :  { %v583_v17 = vld [vmem:[#allocation5 + $0x70] sm:$0xff]   ;;  %v574_v18 = vld [vmem:[#allocation5 + $0x88] sm:$0xff]   ;;  %v578_v22 = vld [vmem:[#allocation5 + $0x98] sm:$0xff]   ;;  %p640_p5 = por %p639_p4, %p638_p3 }
  0x2e   :  { %494 = vmatpush3.bf16.msra.mxu0 %v563_v2  ;;  %514 = vmatpush3.bf16.msra.mxu1 %v573_v6  ;;  %v586_v20 = vld [vmem:[#allocation2 + $0x4] ss:$12 sps:$4 sm:$0xff]   ;;  %v576_v21 = vld [vmem:[#allocation5 + $0x90] sm:$0xff]   ;;  %v580_v23 = vld [vmem:[#allocation5 + $0xa0] sm:$0xff]  }
  0x2f   :  { %495 = vmatprep.subr.bf16.mxu0 %v667_v0  ;;  %515 = vmatprep.subr.bf16.mxu1 %v667_v0  ;;  %v582_v24 = vld [vmem:[#allocation5 + $0xa8] sm:$0xff]   ;;  %v584_v25 = vld [vmem:[#allocation5 + $0xb0] sm:$0xff]   ;;  %v587_v26 = vld [vmem:[#allocation5 + $0xb8] sm:$0xff]   ;;  %p641_p6 = pnand %p640_p5, %p634_p2 }
  0x30   :  { %v588_v27 = vld [vmem:[#allocation2 + $0x8] ss:$12 sps:$4 sm:$0xff]   ;;  %v432_v28 = vld [vmem:[%s769_s2] ss:$0 sm:$0xff]  ;;  %v443_v35 = vld [vmem:[%s769_s2 + $0x1] ss:$0 sm:$0xff] }
  0x31   :  { %v454_v42 = vld [vmem:[%s769_s2 + $0x2] ss:$0 sm:$0xff] }
  0x32   :  { %496 = vmatpush3.bf16.msra.mxu0 %v564_v3  ;;  %516 = vmatpush3.bf16.msra.mxu1 %v575_v8 }
  0x33   :  { %497 = vmatprep.subr.bf16.mxu0 %v667_v0  ;;  %517 = vmatprep.subr.bf16.mxu1 %v667_v0 }
  0x36   :  { %498 = vmatpush3.bf16.msra.mxu0 %v565_v5  ;;  %518 = vmatpush3.bf16.msra.mxu1 %v577_v10 }
  0x37   :  { %499 = vmatprep.subr.bf16.mxu0 %v667_v0  ;;  %519 = vmatprep.subr.bf16.mxu1 %v667_v0 }
  0x3a   :  { %500 = vmatpush3.bf16.msra.mxu0 %v566_v7  ;;  %520 = vmatpush3.bf16.msra.mxu1 %v579_v12 }
  0x3b   :  { %501 = vmatprep.subr.bf16.mxu0 %v667_v0  ;;  %521 = vmatprep.subr.bf16.mxu1 %v667_v0 }
  0x3e   :  { %502 = vmatpush3.bf16.msra.mxu0 %v567_v9  ;;  %522 = vmatpush3.bf16.msra.mxu1 %v581_v14 }
  0x3f   :  { %503 = vmatprep.subr.bf16.mxu0 %v667_v0  ;;  %523 = vmatprep.subr.bf16.mxu1 %v667_v0 }
  0x42   :  { %504 = vmatpush3.bf16.msra.mxu0 %v568_v11  ;;  %524 = vmatpush3.bf16.msra.mxu1 %v583_v17 }
  0x43   :  { %505 = vmatprep.subr.bf16.mxu0 %v667_v0  ;;  %525 = vmatprep.subr.bf16.mxu1 %v667_v0 }
  0x46   :  { %506 = vmatpush3.bf16.msra.mxu0 %v569_v13  ;;  %526 = vmatpush3.bf16.msra.mxu1 %v585_v19 }
  0x47   :  { %531 = vmatprep.subr.bf16.mxu0 %v667_v0 }
  0x49   :  { %508 = vmatmul.mubr.bf16.vlgmr.msra.gmra.mrb[0].mxu0 %v571_v15  ;;  %528 = vmatmul.mubr.bf16.vlgmr.msra.gmra.mrb[0].mxu1 %v586_v20 }
  0x4a   :  { %532 = vmatpush3.bf16.msra.mxu0 %v572_v16  ;;  %547 = vmatprep.mubr.msk.bf16.mxu0 %vm668_vm0, %v667_v0 }
  0x4b   :  { %533 = vmatprep.subr.bf16.mxu0 %v667_v0 }
  0x4e   :  { %534 = vmatpush3.bf16.msra.mxu0 %v574_v18 }
  0x4f   :  { %535 = vmatprep.subr.bf16.mxu0 %v667_v0 }
  0x52   :  { %536 = vmatpush3.bf16.msra.mxu0 %v576_v21 }
  0x53   :  { %537 = vmatprep.subr.bf16.mxu0 %v667_v0 }
  0x56   :  { %538 = vmatpush3.bf16.msra.mxu0 %v578_v22 }
  0x57   :  { %539 = vmatprep.subr.bf16.mxu0 %v667_v0 }
  0x5a   :  { %540 = vmatpush3.bf16.msra.mxu0 %v580_v23 }
  0x5b   :  { %541 = vmatprep.subr.bf16.mxu0 %v667_v0 }
  0x5e   :  { %542 = vmatpush3.bf16.msra.mxu0 %v582_v24 }
  0x5f   :  { %543 = vmatprep.subr.bf16.mxu0 %v667_v0 }
  0x62   :  { %544 = vmatpush3.bf16.msra.mxu0 %v584_v25 }
  0x63   :  { %545 = vmatprep.subr.bf16.mxu0 %v667_v0 }
  0x66   :  { %546 = vmatpush3.bf16.msra.mxu0 %v587_v26 }
  0x69   :  { %548 = vmatmul.mubr.bf16.vlgmr.msra.gmra.mrb[4].mxu0 %v588_v27 }
 0x11c   :  { %v157_v29 = vpop.f32.mrb[0].mxu0  ;;  %v281_v36 = vpop.f32.mrb[0].mxu1 }
 0x11d   :  { %v158_v30 = vadd.f32 %v432_v28, %v157_v29  ;;  %v509_v31 = vpop.f32.mrb[1].mxu0  ;;  %v282_v37 = vadd.f32 %v443_v35, %v281_v36  ;;  %v529_v38 = vpop.f32.mrb[1].mxu1 }
 0x11e   :  { %v160_v32 = vpop.f32.mrb[2].mxu0  ;;  %v284_v39 = vpop.f32.mrb[2].mxu1 }
 0x11f   :  { %164 = vst [vmem:[#allocation7] sm:$0xff] %v158_v30  ;;  %v161_v33 = vadd.f32 %v432_v28, %v160_v32  ;;  %v510_v34 = vpop.f32.mrb[3].mxu0  ;;  %288 = vst [vmem:[#allocation7 + $0x8] sm:$0xff] %v282_v37  ;;  %v285_v40 = vadd.f32 %v443_v35, %v284_v39  ;;  %v530_v41 = vpop.f32.mrb[3].mxu1 }
 0x121   :  { %165 = vst [vmem:[#allocation7 + $0x18] sm:$0xff] %v161_v33  ;;  %289 = vst [vmem:[#allocation7 + $0x20] sm:$0xff] %v285_v40 }
 0x13c   :  { %v405_v43 = vpop.f32.mrb[4].mxu0 }
 0x13d   :  { %v406_v44 = vadd.f32 %v454_v42, %v405_v43  ;;  %v549_v45 = vpop.f32.mrb[5].mxu0 }
 0x13e   :  { %v408_v46 = vpop.f32.mrb[6].mxu0 }
 0x13f   :  { %412 = vst [vmem:[#allocation7 + $0x10] sm:$0xff] %v406_v44  ;;  %v409_v47 = vadd.f32 %v454_v42, %v408_v46  ;;  %v550_v48 = vpop.f32.mrb[7].mxu0 }
 0x141   :  { %413 = vst [vmem:[#allocation7 + $0x28] sm:$0xff] %v409_v47 }
 0x142   :  { %644 = shalt.err (!%p641_p6)
}
 0x143   :  { %s645_s21 = scalar_lea.hbm %s770_s3, 768 }
 0x144   :  { %p646_p7 = scmp.ne.s32.totalorder %s770_s3, %s645_s21  ;;  %p649_p8 = scmp.lt.u32.totalorder %s645_s21, %s770_s3 }
 0x146   :  { %p651_p9 = pnand %p649_p8, %p646_p7 }
 0x148   :  { %654 = shalt.err (!%p651_p9)
}
 0x149   :  { %s670_s26 = smov 384   ;;  %s671_s27 = smov 24  }
 0x14a   :  { %425 = dma.vmem_to_hbm [thread:$0]  %s420_s18, 768, %s770_s3, [#allocation4], %s670_s26, %s670_s26, %s671_s27  }
 0x14b   :  { %659 = dma.done.wait [#allocation4], 768  }
 0x14c   :  { %660 = vsyncadd [#allocation4], 4294966528 }
 0x14d   :  { %429 = vsyncpa [#allocation3], 1 }
 0x14e   :  { %430 = vsyncpa [#allocation6], 1 }
 0x14f   :  { %431 = vsyncpa [#allocation4], 1 }

</bundles_post_ra>
